<compile_context>
chip_gen: v6e
topology: v6e:2x2x1
jax: 0.10.0
libtpu: 0.0.40
codegen_flags: <defaults>
</compile_context>

<pallas_src>
import functools

import jax
import jax.numpy as jnp
import numpy as np
from jax.experimental import pallas as pl
from jax.experimental.pallas import tpu as pltpu


def _round_down_128(x):
    return max(128, (x // 128) * 128)


def _auto_tile_n(K, HW):
    """Query-tile width: as large as possible (amortize ~0.35us/grid-step)
    while keeping ~6 live (K, tile_n) f32 intermediates under ~12 MiB so the
    kernel fits comfortably even under v7x's 64 MiB VMEM ceiling."""
    if HW < 128:
        return HW                              # minor block == full dim is legal
    budget_cols = max(128, (12 * 1024 * 1024) // (6 * 4 * max(K, 1)))
    tn = min(2048, budget_cols)
    tn = _round_down_128(tn)
    tn = min(tn, _round_down_128(HW))          # never wider than the row itself
    return tn


def _make_vq_kernel(C, D_AUG, K, tile_n, HW, need_mask, compute_dtype):
    """Per-tile kernel (batch block-dims squeezed away).

    z_ref   : (C, TN)       query tile, queries mapped to lanes
    wd_ref  : (K, D_AUG)    [-2*W^T | |w_k|^2 | 0-pad]  -> distance in ONE matmul
    w_ref   : (C, K)        codebook, for the z_q lookup matmul
    zq_ref  : (C, TN)       quantized outputs (lane-dense)
    idx_ref : (1, TN)       winning code per query (lane-dense)
    cnt_ref : (K, 1)        per-tile code histogram
    zaug_ref: (D_AUG, TN)   VMEM scratch: z with a ones row (+ zero rows) below
    """

    def kernel(z_ref, wd_ref, w_ref, zq_ref, idx_ref, cnt_ref, zaug_ref):
        # Build the augmented query tile in scratch (sublane-aligned height):
        # rows [0,C) = z, row C = 1, rows (C, D_AUG) = 0.  This lets |w_k|^2
        # ride along the distance matmul, removing the (K,TN) VALU add and the
        # lane-padded (K,1) input.  Rewritten every step: with a parallel grid
        # each TensorCore owns its own scratch, so nothing is reused.
        zaug_ref[:C, :] = z_ref[...].astype(compute_dtype)
        zaug_ref[C:C + 1, :] = jnp.ones((1, tile_n), compute_dtype)
        if D_AUG > C + 1:
            zaug_ref[C + 1:, :] = jnp.zeros((D_AUG - C - 1, tile_n), compute_dtype)

        # d[k, n] = |w_k|^2 - 2 <w_k, z_n>   (|z_n|^2 is query-constant: dropped)
        d_t = jax.lax.dot_general(
            wd_ref[...], zaug_ref[...], (((1,), (0,)), ((), ())),
            preferred_element_type=jnp.float32)                  # (K, TN) on MXU

        # First-minimum index per query (column), int32 bookkeeping.
        # NOTE: non-finite inputs are assumed absent; an all-NaN distance column
        # would produce the sentinel index K (z_q = 0 for that query).
        kcol = jax.lax.broadcasted_iota(jnp.int32, (K, 1), 0)    # (K, 1)
        d_min = jnp.min(d_t, axis=0, keepdims=True)              # (1, TN)
        idx = jnp.min(jnp.where(d_t == d_min, kcol, K),
                      axis=0, keepdims=True)                     # (1, TN) int32

        if need_mask:
            # Ragged last tile: out-of-range columns (unspecified pipeline
            # padding) are forced to the sentinel K so they select nothing and
            # never contribute to the per-tile counts.
            col = (pl.program_id(1) * tile_n
                   + jax.lax.broadcasted_iota(jnp.int32, (1, tile_n), 1))
            idx = jnp.where(col < HW, idx, K)

        # Transposed one-hot lives only in vregs/VMEM — never written to HBM.
        enc_t = (kcol == idx).astype(compute_dtype)              # (K, TN)

        # z_q = W[:, idx] via one MXU matmul (exact column selection).
        zq = jax.lax.dot_general(
            w_ref[...], enc_t, (((1,), (0,)), ((), ())),
            preferred_element_type=jnp.float32)                  # (C, TN)

        zq_ref[...] = zq.astype(zq_ref.dtype)
        idx_ref[...] = idx
        # Per-tile code histogram: one lane-reduce of data already in vregs;
        # replaces an N-length HBM scatter-add in the wrapper.
        cnt_ref[...] = jnp.sum(enc_t.astype(jnp.float32), axis=1, keepdims=True)

    return kernel


@functools.partial(
    jax.jit,
    static_argnames=("num_tokens", "beta", "tile_n", "use_bf16",
                     "return_encodings"))
def ema_vector_quantizer_forward(z_nchw, weight, *, num_tokens, beta,
                                 tile_n=None, use_bf16=False,
                                 return_encodings=True):
    """Forward pass of EMAVectorQuantizer (inference semantics).

    z_nchw : (B, C, H, W) float32, C == codebook_dim
    weight : (codebook_dim, num_tokens) float32
    Returns (z_q_nchw, loss, (perplexity, encodings, encoding_indices)).
    `encodings` is the dense (N, K) one-hot only if return_encodings=True
    (it reintroduces O(N*K) HBM traffic and is never produced by the kernel).
    """
    B, C, H, W = z_nchw.shape
    K = num_tokens
    HW = H * W
    N = B * HW

    # Channel-major view; queries live on the lane axis.  No transposes.
    z3 = z_nchw.reshape(B, C, HW)

    compute_dtype = jnp.bfloat16 if use_bf16 else jnp.float32

    # Fused, sublane-aligned distance operand: [-2*W^T | |w_k|^2 | 0-pad].
    D_AUG = ((C + 1 + 7) // 8) * 8
    w2 = jnp.sum(weight * weight, axis=0)[:, None]               # (K, 1)
    parts = [(-2.0 * weight).T, w2]
    if D_AUG > C + 1:
        parts.append(jnp.zeros((K, D_AUG - C - 1), weight.dtype))
    wd = jnp.concatenate(parts, axis=1).astype(compute_dtype)    # (K, D_AUG)
    w_lut = weight.astype(compute_dtype)                         # (C, K)

    if tile_n is None:
        tile_n = _auto_tile_n(K, HW)
    num_tiles = pl.cdiv(HW, tile_n)
    need_mask = (HW % tile_n) != 0

    kernel = _make_vq_kernel(C, D_AUG, K, tile_n, HW, need_mask, compute_dtype)

    # VMEM budget from actual usage, capped at 40 MiB (v7x has 64 MiB per TC).
    itemsize = 2 if use_bf16 else 4
    est = (6 * K * tile_n * itemsize           # (K,TN) intermediates
           + 8 * D_AUG * tile_n * 4            # z / zq / zaug blocks
           + 4 * tile_n * 4                    # idx blocks
           + 2 * K * 128 * itemsize            # wd (lane-padded)
           + 2 * 8 * max(K, 128) * itemsize    # w_lut (sublane-padded)
           + 2 * K * 128 * 4)                  # cnt block (lane-padded)
    vmem_limit = int(min(40 * 1024 * 1024, max(16 * 1024 * 1024, 2 * est)))

    zq3, idx3, cnt = pl.pallas_call(
        kernel,
        grid=(B, num_tiles),
        in_specs=[
            pl.BlockSpec((None, C, tile_n), lambda b, i: (b, 0, i)),      # z
            pl.BlockSpec((K, D_AUG), lambda b, i: (0, 0)),                # [-2W^T||w|^2]
            pl.BlockSpec((C, K), lambda b, i: (0, 0)),                    # codebook
        ],
        out_specs=[
            pl.BlockSpec((None, C, tile_n), lambda b, i: (b, 0, i)),      # z_q
            pl.BlockSpec((None, 1, tile_n), lambda b, i: (b, 0, i)),      # indices
            pl.BlockSpec((None, None, K, 1), lambda b, i: (b, i, 0, 0)),  # counts
        ],
        out_shape=[
            jax.ShapeDtypeStruct((B, C, HW), jnp.float32),
            jax.ShapeDtypeStruct((B, 1, HW), jnp.int32),
            jax.ShapeDtypeStruct((B, num_tiles, K, 1), jnp.float32),
        ],
        scratch_shapes=[pltpu.VMEM((D_AUG, tile_n), compute_dtype)],
        compiler_params=pltpu.CompilerParams(
            dimension_semantics=("parallel", "parallel"),  # no accumulators ->
            vmem_limit_bytes=vmem_limit,                   # both v7x TCs usable
        ),
    )(z3, wd, w_lut)

    # Pallas outputs carry no VJP; everything downstream is stop-gradded so the
    # only gradient path is the straight-through one into z (as in torch).
    zq3 = jax.lax.stop_gradient(zq3)
    idx3 = jax.lax.stop_gradient(idx3)
    cnt = jax.lax.stop_gradient(cnt)

    idx_bn = idx3[:, 0, :]                                   # (B, HW) int32
    encoding_indices = idx_bn.reshape(B, H, W)
    zq_nchw = zq3.reshape(B, C, H, W)

    # loss = beta * mse(stop_grad(z_q), z) — gradient flows into z only.
    loss = beta * jnp.mean((zq_nchw - z_nchw) ** 2)

    # Perplexity from the in-kernel per-tile histograms.
    counts = jnp.sum(cnt, axis=(0, 1))[:, 0]                 # (K,)
    avg_probs = counts / N
    perplexity = jnp.exp(-jnp.sum(avg_probs * jnp.log(avg_probs + 1e-10)))

    # Dense (N, K) one-hot only to honor the torch return contract.
    if return_encodings:
        encodings = jax.nn.one_hot(idx_bn.reshape(-1), K, dtype=z_nchw.dtype)
    else:
        encodings = None

    # Straight-through estimator, directly in NCHW.
    z_q_out = z_nchw + jax.lax.stop_gradient(zq_nchw - z_nchw)

    return z_q_out, loss, (perplexity, encodings, encoding_indices)


def _reference_forward(z_nchw, weight, num_tokens, beta):
    """Plain-JAX reference mirroring the PyTorch forward (for verification)."""
    B, C, H, W = z_nchw.shape
    z = jnp.transpose(z_nchw, (0, 2, 3, 1))
    zf = z.reshape(-1, C)
    d = (jnp.sum(zf ** 2, axis=1, keepdims=True)
         - 2.0 * zf @ weight
         + jnp.sum(weight ** 2, axis=0, keepdims=True))
    idx = jnp.argmin(d, axis=1)
    enc = jax.nn.one_hot(idx, num_tokens, dtype=zf.dtype)
    z_q = weight.T[idx].reshape(B, H, W, C)
    avg_probs = jnp.mean(enc, axis=0)
    perplexity = jnp.exp(-jnp.sum(avg_probs * jnp.log(avg_probs + 1e-10)))
    loss = beta * jnp.mean((z_q - z) ** 2)
    z_q = z + jax.lax.stop_gradient(z_q - z)
    return (jnp.transpose(z_q, (0, 3, 1, 2)), loss,
            (perplexity, enc, idx.reshape(B, H, W)))


if __name__ == "__main__":
    num_tokens = 128          # codebook size
    codebook_dim = 4          # == channel dim of z
    beta = 0.25

    key = jax.random.PRNGKey(0)
    k_w, k_z = jax.random.split(key)

    weight = jax.random.normal(k_w, (codebook_dim, num_tokens), dtype=jnp.float32)
    z = jax.random.normal(k_z, (2, codebook_dim, 16, 16), dtype=jnp.float32)

    out = ema_vector_quantizer_forward(z, weight, num_tokens=num_tokens, beta=beta)
    jax.block_until_ready(out)
    z_q, loss, (perplexity, encodings, encoding_indices) = out

    zq_r, loss_r, (perp_r, enc_r, idx_r) = _reference_forward(z, weight, num_tokens, beta)
    np.testing.assert_allclose(np.asarray(z_q), np.asarray(zq_r), rtol=1e-5, atol=1e-5)
    np.testing.assert_allclose(np.asarray(loss), np.asarray(loss_r), rtol=1e-5, atol=1e-6)
    np.testing.assert_allclose(np.asarray(perplexity), np.asarray(perp_r), rtol=1e-5, atol=1e-5)
    np.testing.assert_array_equal(np.asarray(encoding_indices), np.asarray(idx_r))
    np.testing.assert_allclose(np.asarray(encodings), np.asarray(enc_r), atol=0)

    # Second check: multi-tile grid + ragged tail (HW = 15*15 = 225, tile_n=128)
    z_tail = jax.random.normal(jax.random.PRNGKey(1),
                               (2, codebook_dim, 15, 15), dtype=jnp.float32)
    out2 = ema_vector_quantizer_forward(z_tail, weight, num_tokens=num_tokens,
                                        beta=beta, tile_n=128)
    jax.block_until_ready(out2)
    zq2, loss2, (perp2, enc2, idx2) = out2
    zq2_r, loss2_r, (perp2_r, enc2_r, idx2_r) = _reference_forward(
        z_tail, weight, num_tokens, beta)
    np.testing.assert_allclose(np.asarray(zq2), np.asarray(zq2_r), rtol=1e-5, atol=1e-5)
    np.testing.assert_allclose(np.asarray(loss2), np.asarray(loss2_r), rtol=1e-5, atol=1e-6)
    np.testing.assert_allclose(np.asarray(perp2), np.asarray(perp2_r), rtol=1e-5, atol=1e-5)
    np.testing.assert_array_equal(np.asarray(idx2), np.asarray(idx2_r))
    np.testing.assert_allclose(np.asarray(enc2), np.asarray(enc2_r), atol=0)

    print("KERNEL_OK")
</pallas_src>

<mosaic_0001>
module attributes {stable_mosaic.version = 11 : i64} {
  func.func @kernel(%arg0: i32, %arg1: i32, %arg2: memref<1x4x256xf32, #tpu.memory_space<vmem>>, %arg3: memref<128x8xf32, #tpu.memory_space<vmem>>, %arg4: memref<4x128xf32, #tpu.memory_space<vmem>>, %arg5: memref<1x4x256xf32, #tpu.memory_space<vmem>>, %arg6: memref<1x1x256xi32, #tpu.memory_space<vmem>>, %arg7: memref<1x1x128x1xf32, #tpu.memory_space<vmem>>, %arg8: memref<8x256xf32, #tpu.memory_space<vmem>>) attributes {dimension_semantics = [#tpu.dimension_semantics<parallel>, #tpu.dimension_semantics<parallel>], iteration_bounds = array<i64: 2, 1>, scalar_prefetch = 0 : i64, scratch_operands = 1 : i64, tpu.core_type = #tpu.core_type<tc>, window_params = [{transform_indices = @transform_0, window_bounds = array<i64: 1, 4, 256>}, {pipeline_mode = #tpu.pipeline_mode<synchronous>, transform_indices = @transform_1, window_bounds = array<i64: 128, 8>}, {pipeline_mode = #tpu.pipeline_mode<synchronous>, transform_indices = @transform_2, window_bounds = array<i64: 4, 128>}, {transform_indices = @transform_3, window_bounds = array<i64: 1, 4, 256>}, {transform_indices = @transform_4, window_bounds = array<i64: 1, 1, 256>}, {transform_indices = @transform_5, window_bounds = array<i64: 1, 1, 128, 1>}]} {
    %c0 = arith.constant 0 : index
    %c0_0 = arith.constant 0 : index
    %c0_1 = arith.constant 0 : index
    %0 = vector.load %arg2[%c0, %c0_0, %c0_1] : memref<1x4x256xf32, #tpu.memory_space<vmem>>, vector<1x4x256xf32>
    %1 = vector.shape_cast %0 : vector<1x4x256xf32> to vector<4x256xf32>
    %c0_2 = arith.constant 0 : index
    %c0_3 = arith.constant 0 : index
    %2 = vector.load %arg8[%c0_2, %c0_3] : memref<8x256xf32, #tpu.memory_space<vmem>>, vector<4x256xf32>
    tpu.vector_store %arg8[%c0_2, %c0_3], %1 {strides = array<i32>} : memref<8x256xf32, #tpu.memory_space<vmem>>, vector<4x256xf32>,
    %cst = arith.constant 1.000000e+00 : f32
    %3 = vector.broadcast %cst : f32 to vector<1x256xf32>
    %c4 = arith.constant 4 : index
    %c0_4 = arith.constant 0 : index
    %4 = vector.load %arg8[%c4, %c0_4] : memref<8x256xf32, #tpu.memory_space<vmem>>, vector<1x256xf32>
    tpu.vector_store %arg8[%c4, %c0_4], %3 {strides = array<i32>} : memref<8x256xf32, #tpu.memory_space<vmem>>, vector<1x256xf32>,
    %cst_5 = arith.constant 0.000000e+00 : f32
    %5 = vector.broadcast %cst_5 : f32 to vector<3x256xf32>
    %c5 = arith.constant 5 : index
    %c0_6 = arith.constant 0 : index
    %6 = vector.load %arg8[%c5, %c0_6] : memref<8x256xf32, #tpu.memory_space<vmem>>, vector<3x256xf32>
    tpu.vector_store %arg8[%c5, %c0_6], %5 {strides = array<i32>} : memref<8x256xf32, #tpu.memory_space<vmem>>, vector<3x256xf32>,
    %c0_7 = arith.constant 0 : index
    %c0_8 = arith.constant 0 : index
    %7 = vector.load %arg3[%c0_7, %c0_8] : memref<128x8xf32, #tpu.memory_space<vmem>>, vector<128x8xf32>
    %c0_9 = arith.constant 0 : index
    %c0_10 = arith.constant 0 : index
    %8 = vector.load %arg8[%c0_9, %c0_10] : memref<8x256xf32, #tpu.memory_space<vmem>>, vector<8x256xf32>
    %cst_11 = arith.constant dense<0.000000e+00> : vector<128x256xf32>
    %9 = tpu.matmul %7, %8, %cst_11 {dimension_numbers = #tpu.dot_dimension_numbers<[1], [0], [0], [1], [0, 0, 1, 1], [], []>} : vector<128x8xf32>, vector<8x256xf32>, vector<128x256xf32> -> vector<128x256xf32>
    %10 = tpu.iota {dimensions = array<i32: 0>} : vector<128x1xi32>
    %cst_12 = arith.constant dense<0x7F800000> : vector<256xf32>
    %11 = vector.multi_reduction <minimumf>, %9, %cst_12 [0] : vector<128x256xf32> to vector<256xf32>
    %12 = vector.shape_cast %11 : vector<256xf32> to vector<1x256xf32>
    %13 = vector.broadcast %12 : vector<1x256xf32> to vector<128x256xf32>
    %14 = arith.cmpf oeq, %9, %13 : vector<128x256xf32>
    %c128_i32 = arith.constant 128 : i32
    %15 = vector.shape_cast %10 : vector<128x1xi32> to vector<128x1xi32>
    %16 = vector.broadcast %15 : vector<128x1xi32> to vector<128x256xi32>
    %17 = vector.broadcast %c128_i32 : i32 to vector<128x256xi32>
    %18 = arith.select %14, %16, %17 : vector<128x256xi1>, vector<128x256xi32>
    %cst_13 = arith.constant dense<2147483647> : vector<256xi32>
    %19 = vector.multi_reduction <minsi>, %18, %cst_13 [0] : vector<128x256xi32> to vector<256xi32>
    %20 = vector.shape_cast %19 : vector<256xi32> to vector<1x256xi32>
    %21 = vector.broadcast %10 : vector<128x1xi32> to vector<128x256xi32>
    %22 = vector.broadcast %20 : vector<1x256xi32> to vector<128x256xi32>
    %23 = arith.cmpi eq, %21, %22 : vector<128x256xi32>
    %24 = arith.extui %23 : vector<128x256xi1> to vector<128x256xi32>
    %25 = arith.sitofp %24 : vector<128x256xi32> to vector<128x256xf32>
    %c0_14 = arith.constant 0 : index
    %c0_15 = arith.constant 0 : index
    %26 = vector.load %arg4[%c0_14, %c0_15] : memref<4x128xf32, #tpu.memory_space<vmem>>, vector<4x128xf32>
    %cst_16 = arith.constant dense<0.000000e+00> : vector<4x256xf32>
    %27 = tpu.matmul %26, %25, %cst_16 {dimension_numbers = #tpu.dot_dimension_numbers<[1], [0], [0], [1], [0, 0, 1, 1], [], []>} : vector<4x128xf32>, vector<128x256xf32>, vector<4x256xf32> -> vector<4x256xf32>
    %c0_17 = arith.constant 0 : index
    %c0_18 = arith.constant 0 : index
    %c0_19 = arith.constant 0 : index
    %28 = vector.load %arg5[%c0_17, %c0_18, %c0_19] : memref<1x4x256xf32, #tpu.memory_space<vmem>>, vector<1x4x256xf32>
    %29 = vector.shape_cast %28 : vector<1x4x256xf32> to vector<4x256xf32>
    %30 = vector.shape_cast %27 : vector<4x256xf32> to vector<1x4x256xf32>
    tpu.vector_store %arg5[%c0_17, %c0_18, %c0_19], %30 {strides = array<i32>} : memref<1x4x256xf32, #tpu.memory_space<vmem>>, vector<1x4x256xf32>,
    %c0_20 = arith.constant 0 : index
    %c0_21 = arith.constant 0 : index
    %c0_22 = arith.constant 0 : index
    %31 = vector.load %arg6[%c0_20, %c0_21, %c0_22] : memref<1x1x256xi32, #tpu.memory_space<vmem>>, vector<1x1x256xi32>
    %32 = vector.shape_cast %31 : vector<1x1x256xi32> to vector<1x256xi32>
    %33 = vector.shape_cast %20 : vector<1x256xi32> to vector<1x1x256xi32>
    tpu.vector_store %arg6[%c0_20, %c0_21, %c0_22], %33 {strides = array<i32>} : memref<1x1x256xi32, #tpu.memory_space<vmem>>, vector<1x1x256xi32>,
    %cst_23 = arith.constant dense<0.000000e+00> : vector<128xf32>
    %34 = vector.multi_reduction <add>, %25, %cst_23 [1] : vector<128x256xf32> to vector<128xf32>
    %35 = vector.shape_cast %34 : vector<128xf32> to vector<128x1xf32>
    %c0_24 = arith.constant 0 : index
    %c0_25 = arith.constant 0 : index
    %c0_26 = arith.constant 0 : index
    %c0_27 = arith.constant 0 : index
    %36 = vector.load %arg7[%c0_24, %c0_25, %c0_26, %c0_27] : memref<1x1x128x1xf32, #tpu.memory_space<vmem>>, vector<1x1x128x1xf32>
    %37 = vector.shape_cast %36 : vector<1x1x128x1xf32> to vector<128x1xf32>
    %38 = vector.shape_cast %35 : vector<128x1xf32> to vector<1x1x128x1xf32>
    tpu.vector_store %arg7[%c0_24, %c0_25, %c0_26, %c0_27], %38 {strides = array<i32>} : memref<1x1x128x1xf32, #tpu.memory_space<vmem>>, vector<1x1x128x1xf32>,
    return
  }
  func.func @transform_0(%arg0: i32, %arg1: i32) -> (i32, i32, i32) {
    %c0_i32 = arith.constant 0 : i32
    %c0_i32_0 = arith.constant 0 : i32
    return %arg0, %c0_i32, %arg1 : i32, i32, i32
  }
  func.func @transform_1(%arg0: i32, %arg1: i32) -> (i32, i32) {
    %c0_i32 = arith.constant 0 : i32
    %c0_i32_0 = arith.constant 0 : i32
    %c0_i32_1 = arith.constant 0 : i32
    return %c0_i32, %c0_i32_0 : i32, i32
  }
  func.func @transform_2(%arg0: i32, %arg1: i32) -> (i32, i32) {
    %c0_i32 = arith.constant 0 : i32
    %c0_i32_0 = arith.constant 0 : i32
    %c0_i32_1 = arith.constant 0 : i32
    return %c0_i32, %c0_i32_0 : i32, i32
  }
  func.func @transform_3(%arg0: i32, %arg1: i32) -> (i32, i32, i32) {
    %c0_i32 = arith.constant 0 : i32
    %c0_i32_0 = arith.constant 0 : i32
    return %arg0, %c0_i32, %arg1 : i32, i32, i32
  }
  func.func @transform_4(%arg0: i32, %arg1: i32) -> (i32, i32, i32) {
    %c0_i32 = arith.constant 0 : i32
    %c0_i32_0 = arith.constant 0 : i32
    return %arg0, %c0_i32, %arg1 : i32, i32, i32
  }
  func.func @transform_5(%arg0: i32, %arg1: i32) -> (i32, i32, i32, i32) {
    %c0_i32 = arith.constant 0 : i32
    %c0_i32_0 = arith.constant 0 : i32
    %c0_i32_1 = arith.constant 0 : i32
    return %arg0, %arg1, %c0_i32, %c0_i32_0 : i32, i32, i32, i32
  }
}

</mosaic_0001>

<bundles_post_ra>
// kernel: squeeze.3
= control target key start
LH: loop header
LB: loop body
LE: loop exit
PB: predicated region body
PF: predicated region fallthrough
CT: control target
= control target key end

     0   :  { %s139_s0 = inlined_call_operand.vmem [shape: s32[2,256], index: 0, kind: input, shape index: {}]   ;;  %s140_s1 = inlined_call_operand.hbm [shape: s32[2,16,16], index: 1, kind: output, shape index: {}]  }
   0x1   :  { %v72_v0 = vld [vmem:[%s139_s0 + $0x2] sm:$0x3]  ;;  %v10_v1 = vld [vmem:[%s139_s0] sm:$0x3] }
   0x2   :  { %9 = vst [vmem:[#allocation2 + $0x8] sm:$0x3] %v72_v0  ;;  %11 = vst [vmem:[#allocation2] sm:$0x3] %v10_v1 }
   0x3   :  { %2 = vsyncpa [#allocation1], 0  ;;  %vm13_vm0 = vcmask 130048   ;;  %s103_s0 = smov 112   ;;  %s104_s10 = smov 80  }
   0x4   :  { %s105_s11 = smov 96   ;;  %s106_s12 = smov 64  }
   0x5   :  { %s107_s13 = smov 48   ;;  %s108_s14 = smov 32  }
   0x6   :  { %s109_s15 = smov 16   ;;  %s110_s16 = smov [#allocation0]  }
   0x7   :  { %s66_s17 = sshll.u32 %s110_s16, 4  ;;  %s67_s17 = int_to_ptr.vmem [resolvable:$true] %s66_s17 }
   0x8   :  { %s81_s18 = scalar_lea.vmem %s67_s17, 512  ;;  %p86_p1 = scmp.lt.s32.totalorder %s67_s17, %s67_s17 }
   0x9   :  { %v20_v2 = vld.sshfl [vmem:[#allocation2] sm:$0xff pattern:$0x99999180]   ;;  %p82_p0 = scmp.ne.s32.totalorder %s67_s17, %s81_s18  ;;  %p87_p2 = scmp.lt.s32.totalorder %s81_s18, %s81_s18 }
   0xa   :  { %v12_v3 = vld [vmem:[#allocation2] sm:$0x3]   ;;  %21 = vrot.lane.b32.xlu0 %v20_v2, %s103_s0  ;;  %33 = vrot.lane.b32.xlu1 %v20_v2, %s104_s10  ;;  %v16_v4 = vld [vmem:[#allocation2 + $0x8] sm:$0x3]  }
   0xb   :  { %14 = vst.msk [vmem:[#allocation0] ss:$16 sm:$0x3] %vm13_vm0, %v12_v3   ;;  %19 = vst.msk [vmem:[#allocation0 + $0x8] ss:$16 sm:$0x3] %vm13_vm0, %v16_v4   ;;  %p88_p3 = por %p87_p2, %p86_p1 }
   0xd   :  { %p89_p4 = pnand %p88_p3, %p82_p0 }
   0xe   :  { %27 = vrot.lane.b32.xlu0 %v20_v2, %s105_s11  ;;  %39 = vrot.lane.b32.xlu1 %v20_v2, %s106_s12 }
  0x12   :  { %45 = vrot.lane.b32.xlu0 %v20_v2, %s107_s13  ;;  %51 = vrot.lane.b32.xlu1 %v20_v2, %s108_s14 }
  0x16   :  { %57 = vrot.lane.b32.xlu0 %v20_v2, %s109_s15 }
  0x7c   :  { %v22_v5 = vpop.permute.xlu0 %21   ;;  %v34_v6 = vpop.permute.xlu1 %33  }
  0x7d   :  { %25 = vst.msk [vmem:[#allocation0 + $0x1] ss:$8 sm:$0xf] %vm13_vm0, %v22_v5   ;;  %37 = vst.msk [vmem:[#allocation0 + $0x3] ss:$8 sm:$0xf] %vm13_vm0, %v34_v6  }
  0x80   :  { %v28_v7 = vpop.permute.xlu0 %27   ;;  %v40_v8 = vpop.permute.xlu1 %39  }
  0x81   :  { %31 = vst.msk [vmem:[#allocation0 + $0x2] ss:$8 sm:$0xf] %vm13_vm0, %v28_v7   ;;  %43 = vst.msk [vmem:[#allocation0 + $0x4] ss:$8 sm:$0xf] %vm13_vm0, %v40_v8  }
  0x84   :  { %v46_v9 = vpop.permute.xlu0 %45   ;;  %v52_v10 = vpop.permute.xlu1 %51  }
  0x85   :  { %49 = vst.msk [vmem:[#allocation0 + $0x5] ss:$8 sm:$0xf] %vm13_vm0, %v46_v9   ;;  %55 = vst.msk [vmem:[#allocation0 + $0x6] ss:$8 sm:$0xf] %vm13_vm0, %v52_v10  }
  0x88   :  { %v58_v11 = vpop.permute.xlu0 %57  }
  0x89   :  { %61 = vst.msk [vmem:[#allocation0 + $0x7] ss:$8 sm:$0xf] %vm13_vm0, %v58_v11  }
  0x8a   :  { %92 = shalt.err (!%p89_p4)
}
  0x8b   :  { %69 = dma.vmem_to_hbm [thread:$0]  %s67_s17, 512, %s140_s1, [#allocation1]  }
  0x8c   :  { %101 = dma.done.wait [#allocation1], 512  }
  0x8d   :  { %102 = vsyncadd [#allocation1], 4294966784 }
  0x8e   :  { %71 = vsyncpa [#allocation1], 1 }

// kernel: ema_vector_quantizer_forward.1
= control target key start
LH: loop header
LB: loop body
LE: loop exit
PB: predicated region body
PF: predicated region fallthrough
CT: control target
= control target key end

     0   :  { %s1372_s18 = smov 0   ;;  %s1374_s19 = smov 0   ;;  %s2211_s0 = inlined_call_operand.vmem [shape: f32[2,4,256], index: 0, kind: input, shape index: {}]   ;;  %s2212_s1 = inlined_call_operand.vmem [shape: f32[128,8], index: 1, kind: input, shape index: {}]   ;;  %s2213_s2 = inlined_call_operand.vmem [shape: f32[4,128], index: 2, kind: input, shape index: {}]   ;;  %s2214_s3 = inlined_call_operand.vmem [shape: f32[2,4,256], index: 3, kind: output, shape index: {0}]   ;;  %s2215_s4 = inlined_call_operand.vmem [shape: s32[2,1,256], index: 4, kind: output, shape index: {1}]   ;;  %s2216_s5 = inlined_call_operand.vmem [shape: f32[2,1,128,1], index: 5, kind: output, shape index: {2}]  }
   0x1   :  { %s1376_s20 = smov 0  }
   0x2 LB: > { %s28_s21 = sadd.s32 1, %s1333_s19  ;;  %p1194_p0 = scmp.ge.s32.totalorder %s1337_s20, 1  ;;  %s1337_s20 = sphi %s1376_s20, %s16_s20   ;;  %s1333_s19 = sphi %s1374_s19, %s2251_s19   ;;  %s1329_s18 = sphi %s1372_s18, %s2250_s18  }
   0x3   : > { %p30_p1 = scmp.ge.s32.totalorder %s28_s21, 2  ;;  %p217_p2 = scmp.lt.s32.totalorder %s1337_s20, 3 }
   0x5   : > { %s2253_s21 = smov (%p30_p1, %s28_s21), 0  ;;  %p218_p3 = pnand %p1194_p0, %p217_p2 }
   0x6   : > { %p271_p4 = scmp.lt.s32.totalorder (!%p218_p3), %s1329_s18, 1 }
   0x7   : > { %221 = sbr.rel (%p218_p3) target bundleno = 579 (0x243), region = 32 }
   0xc   : > { %v314_v0 = vlaneseq  ;;  %v1339_v1 = vmov 0.0   ;;  %s2255_s18 = smov (!%p271_p4, %s1329_s18), 1  ;;  %v1340_v3 = vmov 1.0   ;;  %v323_v8 = vld [vmem:[%s2212_s1] sm:$0xff]  ;;  %vm341_vm1 = vcmask 64512   ;;  %v324_v9 = vld [vmem:[%s2212_s1 + $0x8] sm:$0xff] }
   0xd   : > { %322 = vst [vmem:[#allocation2 + $0x8] sm:$0xe0] %v1339_v1  ;;  %321 = vst [vmem:[#allocation2] sm:$0xe0] %v1339_v1  ;;  %454 = vmatprep.mubr.f32.mxu0 %v1339_v1  ;;  %913 = vmatprep.mubr.f32.mxu1 %v1339_v1  ;;  %s1284_s22 = sshll.u32 %s2255_s18, 3  ;;  %v325_v10 = vld [vmem:[%s2212_s1 + $0x10] sm:$0xff] }
   0xe   : > { %vm1397_vm0 = vcmp.lt.s32.totalorder %v314_v0, 256  ;;  %s278_s25 = scalar_lea.vmem %s2211_s0, %s1284_s22  ;;  %v326_v11 = vld [vmem:[%s2212_s1 + $0x18] sm:$0xff]  ;;  %v327_v12 = vld [vmem:[%s2212_s1 + $0x20] sm:$0xff]  ;;  %v328_v13 = vld [vmem:[%s2212_s1 + $0x28] sm:$0xff]  ;;  %s1199_s13 = sshll.u32 %s2255_s18, 1 }
   0xf   : > { %319 = vst.msk [vmem:[#allocation2 + $0x4] ss:$8 sm:$0x3] %vm1397_vm0, %v1340_v3  ;;  %v308_v4 = vld [vmem:[%s278_s25] sm:$0xff]  ;;  %v329_v14 = vld [vmem:[%s2212_s1 + $0x30] sm:$0xff]  ;;  %v330_v15 = vld [vmem:[%s2212_s1 + $0x38] sm:$0xff]  ;;  %s297_s16 = scalar_lea.vmem %s2215_s4, %s1199_s13  ;;  %s288_s30 = scalar_lea.vmem %s2214_s3, %s1284_s22 }
  0x10   : > { %v310_v5 = vcombine.high %v308_v4, %v308_v4  ;;  %312 = vst [vmem:[#allocation2] sm:$0xf] %v308_v4  ;;  %v331_v16 = vld [vmem:[%s2212_s1 + $0x40] sm:$0xff]  ;;  %v332_v17 = vld [vmem:[%s2212_s1 + $0x48] sm:$0xff]  ;;  %v333_v18 = vld [vmem:[%s2212_s1 + $0x50] sm:$0xff]  ;;  %s1286_s24 = sshll.u32 %s2255_s18, 7 }
  0x11   : > { %v334_v19 = vld [vmem:[%s2212_s1 + $0x58] sm:$0xff]  ;;  %v335_v20 = vld [vmem:[%s2212_s1 + $0x60] sm:$0xff]  ;;  %v336_v21 = vld [vmem:[%s2212_s1 + $0x68] sm:$0xff]  ;;  %s2163_s27 = scalar_lea.vmem %s2216_s5, %s1286_s24 }
  0x12   : > { %313 = vst [vmem:[#allocation2 + $0x8] sm:$0xf] %v310_v5  ;;  %v337_v22 = vld [vmem:[%s2212_s1 + $0x70] sm:$0xff]  ;;  %v338_v23 = vld [vmem:[%s2212_s1 + $0x78] sm:$0xff] }
  0x17   : > { %v339_v6 = vld [vmem:[#allocation2] sm:$0xff] }
  0x19   : > { %v340_v7 = vld [vmem:[#allocation2 + $0x8] sm:$0xff] }
  0x1a   : > { %420 = vmatprep.subr.mxu0 %v340_v7 }
  0x1b   : > { %421 = vmatpush1.msra.mxu0 %v339_v6 }
  0x1c   : > { %1202 = vmatmul.mubr.msk.f32.vlgmr.msra.gmra.mxu0 %vm341_vm1, %v323_v8 }
  0x1d   : > { %460 = vmatprep.mubr.f32.mxu0 %v1339_v1 }
  0x20   : > { %1203 = vmatmul.mubr.msk.f32.gmra.mxu0 %vm341_vm1, %v324_v9 }
  0x21   : > { %466 = vmatprep.mubr.f32.mxu0 %v1339_v1 }
  0x24   : > { %1204 = vmatmul.mubr.msk.f32.gmra.mxu0 %vm341_vm1, %v325_v10 }
  0x25   : > { %472 = vmatprep.mubr.f32.mxu0 %v1339_v1 }
  0x28   : > { %1205 = vmatmul.mubr.msk.f32.gmra.mxu0 %vm341_vm1, %v326_v11 }
  0x29   : > { %478 = vmatprep.mubr.f32.mxu0 %v1339_v1 }
  0x2c   : > { %1206 = vmatmul.mubr.msk.f32.gmra.mxu0 %vm341_vm1, %v327_v12 }
  0x2d   : > { %484 = vmatprep.mubr.f32.mxu0 %v1339_v1 }
  0x30   : > { %1207 = vmatmul.mubr.msk.f32.gmra.mxu0 %vm341_vm1, %v328_v13 }
  0x31   : > { %490 = vmatprep.mubr.f32.mxu0 %v1339_v1 }
  0x34   : > { %1208 = vmatmul.mubr.msk.f32.gmra.mxu0 %vm341_vm1, %v329_v14 }
  0x35   : > { %496 = vmatprep.mubr.f32.mxu0 %v1339_v1 }
  0x38   : > { %1209 = vmatmul.mubr.msk.f32.gmra.mxu0 %vm341_vm1, %v330_v15 }
  0x39   : > { %502 = vmatprep.mubr.f32.mxu0 %v1339_v1 }
  0x3c   : > { %1210 = vmatmul.mubr.msk.f32.gmra.mxu0 %vm341_vm1, %v331_v16 }
  0x3d   : > { %508 = vmatprep.mubr.f32.mxu0 %v1339_v1 }
  0x40   : > { %1211 = vmatmul.mubr.msk.f32.gmra.mxu0 %vm341_vm1, %v332_v17 }
  0x41   : > { %514 = vmatprep.mubr.f32.mxu0 %v1339_v1 }
  0x44   : > { %1212 = vmatmul.mubr.msk.f32.gmra.mxu0 %vm341_vm1, %v333_v18 }
  0x45   : > { %520 = vmatprep.mubr.f32.mxu0 %v1339_v1 }
  0x48   : > { %1213 = vmatmul.mubr.msk.f32.gmra.mxu0 %vm341_vm1, %v334_v19 }
  0x49   : > { %526 = vmatprep.mubr.f32.mxu0 %v1339_v1 }
  0x4c   : > { %1214 = vmatmul.mubr.msk.f32.gmra.mxu0 %vm341_vm1, %v335_v20 }
  0x4d   : > { %532 = vmatprep.mubr.f32.mxu0 %v1339_v1 }
  0x50   : > { %1215 = vmatmul.mubr.msk.f32.gmra.mxu0 %vm341_vm1, %v336_v21 }
  0x51   : > { %538 = vmatprep.mubr.f32.mxu0 %v1339_v1 }
  0x54   : > { %1216 = vmatmul.mubr.msk.f32.gmra.mxu0 %vm341_vm1, %v337_v22 }
  0x55   : > { %544 = vmatprep.mubr.f32.mxu0 %v1339_v1 }
  0x58   : > { %1217 = vmatmul.mubr.msk.f32.gmra.mxu0 %vm341_vm1, %v338_v23 }
  0xdc   : > { %v1489_v24 = vpop.f32.mrf.mxu0 }
  0xde   : > { %v1491_v25 = vpop.f32.mrf.mxu0 }
  0xe0   : > { %v1493_v26 = vpop.f32.mrf.mxu0 }
  0xe2   : > { %v1495_v27 = vpop.f32.mrf.mxu0 }
  0xe4   : > { %v1497_v28 = vpop.f32.mrf.mxu0 }
  0xe5   : > { %v568_v49 = vmin.f32 %v1489_v24, %v1497_v28 }
  0xe6   : > { %v1499_v29 = vpop.f32.mrf.mxu0 }
  0xe7   : > { %v589_v52 = vmin.f32 %v1491_v25, %v1499_v29 }
  0xe8   : > { %v1501_v30 = vpop.f32.mrf.mxu0 }
  0xe9   : > { %v569_v50 = vmin.f32 %v1493_v26, %v1501_v30 }
  0xea   : > { %v1503_v31 = vpop.f32.mrf.mxu0 }
  0xeb   : > { %v590_v53 = vmin.f32 %v1495_v27, %v1503_v31 }
  0xec   : > { %v1505_v32 = vpop.f32.mrf.mxu0 }
  0xed   : > { %v570_v54 = vmin.f32 %v568_v49, %v1505_v32 }
  0xee   : > { %v1507_v33 = vpop.f32.mrf.mxu0 }
  0xef   : > { %v591_v57 = vmin.f32 %v589_v52, %v1507_v33 }
  0xf0   : > { %v1509_v34 = vpop.f32.mrf.mxu0 }
  0xf1   : > { %v571_v55 = vmin.f32 %v569_v50, %v1509_v34 }
  0xf2   : > { %v1511_v35 = vpop.f32.mrf.mxu0 }
  0xf3   : > { %v592_v58 = vmin.f32 %v590_v53, %v1511_v35 }
  0xf4   : > { %v1513_v36 = vpop.f32.mrf.mxu0 }
  0xf5   : > { %v572_v59 = vmin.f32 %v570_v54, %v1513_v36 }
  0xf6   : > { %v1515_v37 = vpop.f32.mrf.mxu0 }
  0xf7   : > { %v593_v62 = vmin.f32 %v591_v57, %v1515_v37 }
  0xf8   : > { %v1517_v38 = vpop.f32.mrf.mxu0 }
  0xf9   : > { %v573_v60 = vmin.f32 %v571_v55, %v1517_v38 }
  0xfa   : > { %v1519_v39 = vpop.f32.mrf.mxu0 }
  0xfb   : > { %v594_v63 = vmin.f32 %v592_v58, %v1519_v39 }
  0xfc   : > { %v1521_v40 = vpop.f32.mrf.mxu0 }
  0xfd   : > { %v574_v4 = vmin.f32 %v572_v59, %v1521_v40  ;;  %v1586_v59 = vshrl.u32 %v314_v0, 7 }
  0xfe   : > { %v1523_v41 = vpop.f32.mrf.mxu0 }
  0xff   : > { %v595_v7 = vmin.f32 %v593_v62, %v1523_v41  ;;  %v1606_v0 = vadd.s32 48, %v1586_v59 }
 0x100   : > { %v1525_v42 = vpop.f32.mrf.mxu0 }
 0x101   : > { %v575_v5 = vmin.f32 %v573_v60, %v1525_v42 }
 0x102   : > { %v1527_v43 = vpop.f32.mrf.mxu0 }
 0x103   : > { %v596_v8 = vmin.f32 %v594_v63, %v1527_v43 }
 0x104   : > { %v1529_v44 = vpop.f32.mrf.mxu0 }
 0x105   : > { %v576_v9 = vmin.f32 %v574_v4, %v1529_v44  ;;  %v1591_v4 = vadd.s32 8, %v1586_v59 }
 0x106   : > { %v1531_v45 = vpop.f32.mrf.mxu0 }
 0x107   : > { %v597_v12 = vmin.f32 %v595_v7, %v1531_v45  ;;  %v1597_v7 = vadd.s32 24, %v1586_v59 }
 0x108   : > { %v1533_v46 = vpop.f32.mrf.mxu0 }
 0x109   : > { %v577_v10 = vmin.f32 %v575_v5, %v1533_v46  ;;  %v1594_v5 = vadd.s32 16, %v1586_v59 }
 0x10a   : > { %v1535_v47 = vpop.f32.mrf.mxu0 }
 0x10b   : > { %v598_v13 = vmin.f32 %v596_v8, %v1535_v47  ;;  %v1600_v8 = vadd.s32 32, %v1586_v59 }
 0x10c   : > { %v1537_v48 = vpop.f32.mrf.mxu0 }
 0x10d   : > { %v578_v14 = vmin.f32 %v576_v9, %v1537_v48  ;;  %v1603_v9 = vadd.s32 40, %v1586_v59 }
 0x10e   : > { %v1543_v51 = vpop.f32.mrf.mxu0 }
 0x10f   : > { %v599_v17 = vmin.f32 %v597_v12, %v1543_v51 }
 0x110   : > { %v1551_v56 = vpop.f32.mrf.mxu0 }
 0x111   : > { %v579_v15 = vmin.f32 %v577_v10, %v1551_v56  ;;  %v1609_v10 = vadd.s32 56, %v1586_v59 }
 0x112   : > { %v1557_v61 = vpop.f32.mrf.mxu0 }
 0x113   : > { %v600_v18 = vmin.f32 %v598_v13, %v1557_v61  ;;  %v1622_v13 = vadd.s32 64, %v1586_v59 }
 0x114   : > { %v1563_v6 = vpop.f32.mrf.mxu0 }
 0x115   : > { %v580_v19 = vmin.f32 %v578_v14, %v1563_v6  ;;  %v1625_v14 = vadd.s32 72, %v1586_v59 }
 0x116   : > { %v1569_v11 = vpop.f32.mrf.mxu0 }
 0x117   : > { %v601_v22 = vmin.f32 %v599_v17, %v1569_v11 }
 0x118   : > { %v1575_v16 = vpop.f32.mrf.mxu0 }
 0x119   : > { %v581_v20 = vmin.f32 %v579_v15, %v1575_v16 }
 0x11a   : > { %v1581_v21 = vpop.f32.mrf.mxu0 }
 0x11b   : > { %v582_v23 = vmin.f32 %v580_v19, %v581_v20  ;;  %v602_v49 = vmin.f32 %v600_v18, %v1581_v21 }
 0x11d   : > { %v583_v50 = vrot.slane %v582_v23, 4  ;;  %v603_v52 = vmin.f32 %v601_v22, %v602_v49  ;;  %v1648_v22 = vadd.s32 120, %v1586_v59 }
 0x11f   : > { %v584_v53 = vmin.f32 %v582_v23, %v583_v50  ;;  %v604_v54 = vrot.slane %v603_v52, 4 }
 0x121   : > { %v585_v55 = vrot.slane %v584_v53, 2  ;;  %v605_v57 = vmin.f32 %v603_v52, %v604_v54 }
 0x123   : > { %v586_v58 = vmin.f32 %v584_v53, %v585_v55  ;;  %v606_v62 = vrot.slane %v605_v57, 2 }
 0x125   : > { %v587_v60 = vrot.slane %v586_v58, 1  ;;  %v607_v12 = vmin.f32 %v605_v57, %v606_v62 }
 0x127   : > { %v1588_v63 = vmin.f32 %v586_v58, %v587_v60  ;;  %v608_v23 = vrot.slane %v607_v12, 1 }
 0x129   : > { %vm616_vm2 = vcmp.eq.f32.partialorder %v1501_v30, %v1588_v63  ;;  %vm610_vm3 = vcmp.eq.f32.partialorder %v1489_v24, %v1588_v63  ;;  %vm612_vm4 = vcmp.eq.f32.partialorder %v1493_v26, %v1588_v63  ;;  %vm614_vm5 = vcmp.eq.f32.partialorder %v1497_v28, %v1588_v63 }
 0x12a   : > { %vm618_vm6 = vcmp.eq.f32.partialorder %v1505_v32, %v1588_v63  ;;  %v1628_v30 = vadd.s32 80, %v1586_v59  ;;  %v1631_v24 = vadd.s32 88, %v1586_v59  ;;  %v1634_v26 = vadd.s32 96, %v1586_v59 }
 0x12b   : > { %v1637_v28 = vadd.s32 104, %v1586_v59  ;;  %v1640_v32 = vadd.s32 112, %v1586_v59  ;;  %v648_v15 = vsel %vm616_vm2, %v1597_v7, 128  ;;  %v642_v17 = vsel %vm610_vm3, %v1586_v59, 128 }
 0x12c   : > { %v644_v18 = vsel %vm612_vm4, %v1591_v4, 128  ;;  %v646_v19 = vsel %vm614_vm5, %v1594_v5, 128  ;;  %v650_v20 = vsel %vm618_vm6, %v1600_v8, 128  ;;  %vm620_vm7 = vcmp.eq.f32.partialorder %v1509_v34, %v1588_v63 }
 0x12d   : > { %vm622_vm8 = vcmp.eq.f32.partialorder %v1513_v36, %v1588_v63  ;;  %vm624_vm9 = vcmp.eq.f32.partialorder %v1517_v38, %v1588_v63  ;;  %vm626_vm10 = vcmp.eq.f32.partialorder %v1521_v40, %v1588_v63  ;;  %vm628_vm11 = vcmp.eq.f32.partialorder %v1525_v42, %v1588_v63 }
 0x12e   : > { %vm630_vm12 = vcmp.eq.f32.partialorder %v1529_v44, %v1588_v63  ;;  %vm632_vm13 = vcmp.eq.f32.partialorder %v1533_v46, %v1588_v63  ;;  %vm674_vm14 = vcmp.lt.s32.totalorder %v642_v17, %v646_v19  ;;  %vm676_vm15 = vcmp.lt.s32.totalorder %v644_v18, %v648_v15 }
 0x12f   : > { %vm634_vm1 = vcmp.eq.f32.partialorder %v1537_v48, %v1588_v63  ;;  %v652_v34 = vsel %vm620_vm7, %v1603_v9, 128  ;;  %v675_v49 = vsel %vm674_vm14, %v642_v17, %v646_v19  ;;  %v677_v50 = vsel %vm676_vm15, %v644_v18, %v648_v15 }
 0x130   : > { %vm636_vm2 = vcmp.eq.f32.partialorder %v1551_v56, %v1588_v63  ;;  %vm638_vm3 = vcmp.eq.f32.partialorder %v1563_v6, %v1588_v63  ;;  %vm678_vm4 = vcmp.lt.s32.totalorder %v675_v49, %v650_v20  ;;  %vm680_vm5 = vcmp.lt.s32.totalorder %v677_v50, %v652_v34 }
 0x131   : > { %v654_v52 = vsel %vm622_vm8, %v1606_v0, 128  ;;  %v656_v53 = vsel %vm624_vm9, %v1609_v10, 128  ;;  %v679_v54 = vsel %vm678_vm4, %v675_v49, %v650_v20  ;;  %v681_v55 = vsel %vm680_vm5, %v677_v50, %v652_v34 }
 0x132   : > { %vm640_vm6 = vcmp.eq.f32.partialorder %v1575_v16, %v1588_v63  ;;  %vm682_vm7 = vcmp.lt.s32.totalorder %v679_v54, %v654_v52  ;;  %vm684_vm14 = vcmp.lt.s32.totalorder %v681_v55, %v656_v53  ;;  %v1681_v57 = vmin.f32 %v607_v12, %v608_v23 }
 0x133   : > { %v658_v36 = vsel %vm626_vm10, %v1622_v13, 128  ;;  %v660_v38 = vsel %vm628_vm11, %v1625_v14, 128  ;;  %v683_v58 = vsel %vm682_vm7, %v679_v54, %v654_v52  ;;  %v685_v60 = vsel %vm684_vm14, %v681_v55, %v656_v53 }
 0x134   : > { %v662_v62 = vsel %vm630_vm12, %v1628_v30, 128  ;;  %v664_v12 = vsel %vm632_vm13, %v1631_v24, 128  ;;  %vm686_vm8 = vcmp.lt.s32.totalorder %v683_v58, %v658_v36  ;;  %vm688_vm9 = vcmp.lt.s32.totalorder %v685_v60, %v660_v38 }
 0x135   : > { %v666_v40 = vsel %vm634_vm1, %v1634_v26, 128  ;;  %v668_v42 = vsel %vm636_vm2, %v1637_v28, 128  ;;  %v687_v15 = vsel %vm686_vm8, %v683_v58, %v658_v36  ;;  %v689_v44 = vsel %vm688_vm9, %v685_v60, %v660_v38 }
 0x136   : > { %v670_v46 = vsel %vm638_vm3, %v1640_v32, 128  ;;  %vm690_vm10 = vcmp.lt.s32.totalorder %v687_v15, %v662_v62  ;;  %vm692_vm11 = vcmp.lt.s32.totalorder %v689_v44, %v664_v12  ;;  %vm617_vm12 = vcmp.eq.f32.partialorder %v1503_v31, %v1681_v57 }
 0x137   : > { %v672_v48 = vsel %vm640_vm6, %v1648_v22, 128  ;;  %v691_v17 = vsel %vm690_vm10, %v687_v15, %v662_v62  ;;  %v693_v56 = vsel %vm692_vm11, %v689_v44, %v664_v12  ;;  %vm611_vm13 = vcmp.eq.f32.partialorder %v1491_v25, %v1681_v57 }
 0x138   : > { %vm694_vm15 = vcmp.lt.s32.totalorder %v691_v17, %v666_v40  ;;  %vm696_vm1 = vcmp.lt.s32.totalorder %v693_v56, %v668_v42  ;;  %vm613_vm2 = vcmp.eq.f32.partialorder %v1495_v27, %v1681_v57  ;;  %vm615_vm3 = vcmp.eq.f32.partialorder %v1499_v29, %v1681_v57 }
 0x139   : > { %v695_v6 = vsel %vm694_vm15, %v691_v17, %v666_v40  ;;  %v697_v31 = vsel %vm696_vm1, %v693_v56, %v668_v42  ;;  %vm619_vm4 = vcmp.eq.f32.partialorder %v1507_v33, %v1681_v57  ;;  %v649_v16 = vsel %vm617_vm12, %v1597_v7, 128 }
 0x13a   : > { %vm698_vm5 = vcmp.lt.s32.totalorder %v695_v6, %v670_v46  ;;  %vm700_vm6 = vcmp.lt.s32.totalorder %v697_v31, %v672_v48  ;;  %vm621_vm7 = vcmp.eq.f32.partialorder %v1511_v35, %v1681_v57  ;;  %vm623_vm14 = vcmp.eq.f32.partialorder %v1515_v37, %v1681_v57 }
 0x13b   : > { %v699_v25 = vsel %vm698_vm5, %v695_v6, %v670_v46  ;;  %v701_v63 = vsel %vm700_vm6, %v697_v31, %v672_v48  ;;  %v643_v18 = vsel %vm611_vm13, %v1586_v59, 128  ;;  %v647_v29 = vsel %vm615_vm3, %v1594_v5, 128 }
 0x13c   : > { %vm702_vm8 = vcmp.lt.s32.totalorder %v699_v25, %v701_v63  ;;  %vm625_vm9 = vcmp.eq.f32.partialorder %v1519_v39, %v1681_v57  ;;  %vm627_vm10 = vcmp.eq.f32.partialorder %v1523_v41, %v1681_v57  ;;  %v645_v19 = vsel %vm613_vm2, %v1591_v4, 128 }
 0x13d   : > { %v703_v20 = vsel %vm702_vm8, %v699_v25, %v701_v63  ;;  %vm629_vm11 = vcmp.eq.f32.partialorder %v1527_v43, %v1681_v57  ;;  %vm631_vm12 = vcmp.eq.f32.partialorder %v1531_v45, %v1681_v57  ;;  %vm633_vm13 = vcmp.eq.f32.partialorder %v1535_v47, %v1681_v57 }
 0x13e   : > { %v704_v23 = vrot.slane %v703_v20, 4  ;;  %vm635_vm15 = vcmp.eq.f32.partialorder %v1543_v51, %v1681_v57  ;;  %vm637_vm1 = vcmp.eq.f32.partialorder %v1557_v61, %v1681_v57  ;;  %vm713_vm3 = vcmp.lt.s32.totalorder %v643_v18, %v647_v29 }
 0x13f   : > { %v651_v27 = vsel %vm619_vm4, %v1600_v8, 128  ;;  %v714_v34 = vsel %vm713_vm3, %v643_v18, %v647_v29  ;;  %vm715_vm5 = vcmp.lt.s32.totalorder %v645_v19, %v649_v16  ;;  %v653_v49 = vsel %vm621_vm7, %v1603_v9, 128 }
 0x140   : > { %vm705_vm6 = vcmp.lt.s32.totalorder %v703_v20, %v704_v23  ;;  %v716_v50 = vsel %vm715_vm5, %v645_v19, %v649_v16  ;;  %vm717_vm8 = vcmp.lt.s32.totalorder %v714_v34, %v651_v27  ;;  %v655_v53 = vsel %vm623_vm14, %v1606_v0, 128 }
 0x141   : > { %v706_v52 = vsel %vm705_vm6, %v703_v20, %v704_v23  ;;  %v718_v54 = vsel %vm717_vm8, %v714_v34, %v651_v27  ;;  %vm719_vm2 = vcmp.lt.s32.totalorder %v716_v50, %v653_v49  ;;  %v657_v55 = vsel %vm625_vm9, %v1609_v10, 128 }
 0x142   : > { %v707_v33 = vrot.slane %v706_v52, 2  ;;  %v720_v36 = vsel %vm719_vm2, %v716_v50, %v653_v49  ;;  %vm721_vm4 = vcmp.lt.s32.totalorder %v718_v54, %v655_v53  ;;  %vm641_vm7 = vcmp.eq.f32.partialorder %v1581_v21, %v1681_v57 }
 0x143   : > { %v659_v35 = vsel %vm627_vm10, %v1622_v13, 128  ;;  %v722_v37 = vsel %vm721_vm4, %v718_v54, %v655_v53  ;;  %vm723_vm14 = vcmp.lt.s32.totalorder %v720_v36, %v657_v55  ;;  %v661_v38 = vsel %vm629_vm11, %v1625_v14, 128 }
 0x144   : > { %vm708_vm3 = vcmp.lt.s32.totalorder %v706_v52, %v707_v33  ;;  %v724_v39 = vsel %vm723_vm14, %v720_v36, %v657_v55  ;;  %vm725_vm9 = vcmp.lt.s32.totalorder %v722_v37, %v659_v35  ;;  %v663_v60 = vsel %vm631_vm12, %v1628_v30, 128 }
 0x145   : > { %v709_v58 = vsel %vm708_vm3, %v706_v52, %v707_v33  ;;  %v726_v62 = vsel %vm725_vm9, %v722_v37, %v659_v35  ;;  %vm727_vm2 = vcmp.lt.s32.totalorder %v724_v39, %v661_v38  ;;  %v665_v12 = vsel %vm633_vm13, %v1631_v24, 128 }
 0x146   : > { %v710_v41 = vrot.slane %v709_v58, 1  ;;  %v728_v40 = vsel %vm727_vm2, %v724_v39, %v661_v38  ;;  %vm729_vm10 = vcmp.lt.s32.totalorder %v726_v62, %v663_v60  ;;  %v667_v43 = vsel %vm635_vm15, %v1634_v26, 128 }
 0x147   : > { %v669_v45 = vsel %vm637_vm1, %v1637_v28, 128  ;;  %v730_v42 = vsel %vm729_vm10, %v726_v62, %v663_v60  ;;  %vm731_vm11 = vcmp.lt.s32.totalorder %v728_v40, %v665_v12  ;;  %vm2231_vm5 = vcmp.eq.f32.partialorder %v1569_v11, %v1681_v57 }
 0x148   : > { %vm711_vm12 = vcmp.lt.s32.totalorder %v709_v58, %v710_v41  ;;  %v671_v47 = vsel %vm2231_vm5, %v1640_v32, 128  ;;  %v732_v15 = vsel %vm731_vm11, %v728_v40, %v665_v12  ;;  %vm733_vm13 = vcmp.lt.s32.totalorder %v730_v42, %v667_v43 }
 0x149   : > { %v1798_v44 = vsel %vm711_vm12, %v709_v58, %v710_v41  ;;  %v673_v51 = vsel %vm641_vm7, %v1648_v22, 128  ;;  %v734_v46 = vsel %vm733_vm13, %v730_v42, %v667_v43  ;;  %vm735_vm15 = vcmp.lt.s32.totalorder %v732_v15, %v669_v45 }
 0x14a   : > { %v736_v61 = vsel %vm735_vm15, %v732_v15, %v669_v45  ;;  %vm737_vm1 = vcmp.lt.s32.totalorder %v734_v46, %v671_v47  ;;  %vm2219_vm14 = vcmp.eq.s32.totalorder %v1594_v5, %v1798_v44  ;;  %vm2217_vm3 = vcmp.eq.s32.totalorder %v1586_v59, %v1798_v44 }
 0x14b   : > { %v738_v11 = vsel %vm737_vm1, %v734_v46, %v671_v47  ;;  %vm739_vm4 = vcmp.lt.s32.totalorder %v736_v61, %v673_v51  ;;  %vm778_vm7 = vcmp.eq.s32.totalorder %v1637_v28, %v1798_v44  ;;  %vm2220_vm10 = vcmp.eq.s32.totalorder %v1597_v7, %v1798_v44 }
 0x14c   : > { %v740_v21 = vsel %vm739_vm4, %v736_v61, %v673_v51  ;;  %vm2218_vm11 = vcmp.eq.s32.totalorder %v1591_v4, %v1798_v44  ;;  %v1341_v48 = vmov 1966171168   ;;  %vm774_vm12 = vcmp.eq.s32.totalorder %v1631_v24, %v1798_v44 }
 0x14d   : > { %vm741_vm9 = vcmp.lt.s32.totalorder %v738_v11, %v740_v21  ;;  %v927_v17 = vunpack.c.l.s4 %v1341_v48  ;;  %vm772_vm5 = vcmp.eq.s32.totalorder %v1628_v30, %v1798_v44  ;;  %vm2224_vm13 = vcmp.eq.s32.totalorder %v1603_v9, %v1798_v44 }
 0x14e   : > { %v742_v57 = vsel %vm741_vm9, %v738_v11, %v740_v21  ;;  %vm2223_vm15 = vcmp.eq.s32.totalorder %v1600_v8, %v1798_v44  ;;  %vm770_vm1 = vcmp.eq.s32.totalorder %v1625_v14, %v1798_v44  ;;  %vm768_vm4 = vcmp.eq.s32.totalorder %v1622_v13, %v1798_v44 }
 0x14f   : > { %v743_v56 = vrot.slane %v742_v57, 4  ;;  %vm766_vm8 = vcmp.eq.s32.totalorder %v1609_v10, %v1798_v44  ;;  %vm2227_vm6 = vcmp.eq.s32.totalorder %v1606_v0, %v1798_v44  ;;  %v928_v31 = vunpack.c.0.s8 %v927_v17 }
 0x150   : > { %v1222_v18 = vsel %vm2219_vm14, 1.0, %v1339_v1  ;;  %v1218_v29 = vsel %vm2217_vm3, 1.0, %v1339_v1  ;;  %v1224_v20 = vsel %vm2220_vm10, 1.0, %v1339_v1  ;;  %v1220_v23 = vsel %vm2218_vm11, 1.0, %v1339_v1 }
 0x151   : > { %vm744_vm9 = vcmp.lt.s32.totalorder %v742_v57, %v743_v56  ;;  %v931_v63 = vsub.s32 %v928_v31, %v1586_v59  ;;  %v1228_v27 = vsel %vm2224_vm13, 1.0, %v1339_v1  ;;  %v1226_v34 = vsel %vm2223_vm15, 1.0, %v1339_v1 }
 0x152   : > { %v745_v6 = vsel %vm744_vm9, %v742_v57, %v743_v56  ;;  %v1865_v49 = vsel %vm766_vm8, 1.0, %v1339_v1  ;;  %v1871_v50 = vsel %vm2227_vm6, 1.0, %v1339_v1  ;;  %v1877_v52 = vsel %vm770_vm1, 1.0, %v1339_v1 }
 0x153   : > { %v746_v16 = vrot.slane %v745_v6, 2  ;;  %v1883_v53 = vsel %vm768_vm4, 1.0, %v1339_v1  ;;  %v1889_v54 = vsel %vm774_vm12, 1.0, %v1339_v1  ;;  %v1895_v33 = vsel %vm772_vm5, 1.0, %v1339_v1 }
 0x154   : > { %v1903_v36 = vsel %vm778_vm7, 1.0, %v1339_v1  ;;  %vm2232_vm9 = vcmp.eq.s32.totalorder %v1634_v26, %v1798_v44  ;;  %vm2233_vm3 = vcmp.eq.s32.totalorder %v1648_v22, %v1798_v44  ;;  %vm2234_vm10 = vcmp.eq.s32.totalorder %v1648_v22, %v1798_v44 }
 0x155   : > { %vm747_vm2 = vcmp.lt.s32.totalorder %v745_v6, %v746_v16  ;;  %v1909_v35 = vsel %vm2232_vm9, 1.0, %v1339_v1  ;;  %v1915_v37 = vsel %vm2233_vm3, 1.0, %v1339_v1  ;;  %vm2235_vm15 = vcmp.eq.s32.totalorder %v1640_v32, %v1798_v44 }
 0x156   : > { %v748_v25 = vsel %vm747_vm2, %v745_v6, %v746_v16 }
 0x157   : > { %v749_v19 = vrot.slane %v748_v25, 1 }
 0x159   : > { %vm750_vm2 = vcmp.lt.s32.totalorder %v748_v25, %v749_v19 }
 0x15a   : > { %v1897_v55 = vsel %vm750_vm2, %v748_v25, %v749_v19 }
 0x15b   : > { %v925_v38 = vcombine.low %v1798_v44, %v1897_v55  ;;  %vm783_vm2 = vcmp.eq.s32.totalorder %v1648_v22, %v1897_v55  ;;  %vm781_vm11 = vcmp.eq.s32.totalorder %v1640_v32, %v1897_v55  ;;  %vm2221_vm9 = vcmp.eq.s32.totalorder %v1594_v5, %v1897_v55 }
 0x15c   : > { %v1249_v39 = vsel %vm783_vm2, 1.0, %v1339_v1  ;;  %1250 = vmatprep.subr.msk.mxu1 %vm783_vm2, %v1340_v3  ;;  %v1223_v58 = vsel %vm2221_vm9, 1.0, %v1339_v1  ;;  %vm2222_vm3 = vcmp.eq.s32.totalorder %v1586_v59, %v1897_v55  ;;  %vm779_vm14 = vcmp.eq.s32.totalorder %v1637_v28, %v1897_v55 }
 0x15d   : > { %v932_v60 = vrot.slane %v925_v38, %v931_v63  ;;  %1251 = vmatpush1.msk.msra.mxu1 %vm2234_vm10, %v1340_v3  ;;  %v947_v62 = vadd.f32 %v1223_v58, %v1222_v18  ;;  %v1219_v41 = vsel %vm2222_vm3, 1.0, %v1339_v1  ;;  %vm777_vm2 = vcmp.eq.s32.totalorder %v1634_v26, %v1897_v55 }
 0x15e   : > { %1252 = vmatprep.subr.msk.mxu1 %vm781_vm11, %v1340_v3  ;;  %v941_v22 = vadd.f32 %v1219_v41, %v1218_v29  ;;  %vm2226_vm10 = vcmp.eq.s32.totalorder %v1597_v7, %v1897_v55  ;;  %vm2225_vm9 = vcmp.eq.s32.totalorder %v1591_v4, %v1897_v55  ;;  %vm775_vm3 = vcmp.eq.s32.totalorder %v1631_v24, %v1897_v55 }
 0x15f   : > { %v939_v12 = vrot.slane %v932_v60, %v931_v63  ;;  %1253 = vmatpush1.msk.msra.mxu1 %vm2235_vm15, %v1340_v3  ;;  %948 = vadd.xlane.f32.xlu1 %v947_v62  ;;  %v1225_v40 = vsel %vm2226_vm10, 1.0, %v1339_v1  ;;  %v1221_v43 = vsel %vm2225_vm9, 1.0, %v1339_v1  ;;  %vm773_vm13 = vcmp.eq.s32.totalorder %v1628_v30, %v1897_v55 }
 0x160   : > { %942 = vadd.xlane.f32.xlu0 %v941_v22  ;;  %1254 = vmatprep.subr.msk.mxu1 %vm779_vm14, %v1340_v3  ;;  %v950_v45 = vadd.f32 %v1225_v40, %v1224_v20  ;;  %v944_v42 = vadd.f32 %v1221_v43, %v1220_v23  ;;  %vm2228_vm15 = vcmp.eq.s32.totalorder %v1603_v9, %v1897_v55  ;;  %v1241_v47 = vsel %vm775_vm3, 1.0, %v1339_v1 }
 0x161   : > { %940 = vst.msk [vmem:[%s297_s16] sm:$0x3] %vm1397_vm0, %v939_v12  ;;  %1255 = vmatpush1.msk.msra.mxu1 %vm778_vm7, %v1340_v3  ;;  %v1229_v15 = vsel %vm2228_vm15, 1.0, %v1339_v1  ;;  %vm761_vm9 = vcmp.eq.s32.totalorder %v1600_v8, %v1897_v55  ;;  %vm771_vm10 = vcmp.eq.s32.totalorder %v1625_v14, %v1897_v55  ;;  %vm769_vm6 = vcmp.eq.s32.totalorder %v1622_v13, %v1897_v55 }
 0x162   : > { %1256 = vmatprep.subr.msk.mxu1 %vm777_vm2, %v1340_v3  ;;  %v956_v2 = vadd.f32 %v1229_v15, %v1228_v27  ;;  %v1227_v51 = vsel %vm761_vm9, 1.0, %v1339_v1  ;;  %vm767_vm0 = vcmp.eq.s32.totalorder %v1609_v10, %v1897_v55  ;;  %vm765_vm7 = vcmp.eq.s32.totalorder %v1606_v0, %v1897_v55 }
 0x163   : > { %vm2236_vm15 = vcmp.eq.s32.totalorder %v1634_v26, %v1798_v44  ;;  %951 = vadd.xlane.f32.xlu1 %v950_v45  ;;  %v953_v46 = vadd.f32 %v1227_v51, %v1226_v34  ;;  %v1233_v61 = vsel %vm767_vm0, 1.0, %v1339_v1  ;;  %v1231_v11 = vsel %vm765_vm7, 1.0, %v1339_v1 }
 0x164   : > { %1257 = vmatpush1.msk.msra.mxu1 %vm2236_vm15, %v1340_v3  ;;  %v1237_v21 = vsel %vm771_vm10, 1.0, %v1339_v1  ;;  %945 = vadd.xlane.f32.xlu0 %v944_v42  ;;  %v962_v57 = vadd.f32 %v1233_v61, %v1865_v49  ;;  %v959_v48 = vadd.f32 %v1231_v11, %v1871_v50  ;;  %v1235_v56 = vsel %vm769_vm6, 1.0, %v1339_v1 }
 0x165   : > { %1258 = vmatprep.subr.msk.mxu1 %vm775_vm3, %v1340_v3  ;;  %v968_v17 = vadd.f32 %v1237_v21, %v1877_v52  ;;  %v965_v6 = vadd.f32 %v1235_v56, %v1883_v53  ;;  %v974_v31 = vadd.f32 %v1241_v47, %v1889_v54  ;;  %v1239_v16 = vsel %vm773_vm13, 1.0, %v1339_v1 }
 0x166   : > { %1259 = vmatpush1.msk.msra.mxu1 %vm774_vm12, %v1340_v3  ;;  %v1245_v25 = vsel %vm779_vm14, 1.0, %v1339_v1  ;;  %v971_v24 = vadd.f32 %v1239_v16, %v1895_v33  ;;  %v1243_v18 = vsel %vm777_vm2, 1.0, %v1339_v1  ;;  %v986_v29 = vadd.f32 %v1249_v39, %v1915_v37 }
 0x167   : > { %1260 = vmatprep.subr.msk.mxu1 %vm773_vm13, %v1340_v3  ;;  %v980_v63 = vadd.f32 %v1245_v25, %v1903_v36  ;;  %957 = vadd.xlane.f32.xlu1 %v956_v2  ;;  %v977_v28 = vadd.f32 %v1243_v18, %v1909_v35  ;;  %vm2237_vm14 = vcmp.eq.s32.totalorder %v1640_v32, %v1798_v44  ;;  %v1247_v26 = vsel %vm781_vm11, 1.0, %v1339_v1 }
 0x168   : > { %1261 = vmatpush1.msk.msra.mxu1 %vm772_vm5, %v1340_v3  ;;  %v1246_v19 = vsel %vm2237_vm14, 1.0, %v1339_v1  ;;  %954 = vadd.xlane.f32.xlu0 %v953_v46  ;;  %vm2239_vm11 = vcmp.eq.s32.totalorder %v1603_v9, %v1897_v55  ;;  %vm2241_vm12 = vcmp.eq.s32.totalorder %v1600_v8, %v1798_v44  ;;  %vm2242_vm5 = vcmp.eq.s32.totalorder %v1597_v7, %v1897_v55  ;;  %v848_v1 = vld [vmem:[%s2213_s2] sm:$0xf] }
 0x169   : > { %1262 = vmatprep.subr.msk.mxu1 %vm771_vm10, %v1340_v3  ;;  %v983_v30 = vadd.f32 %v1247_v26, %v1246_v19  ;;  %vm2243_vm13 = vcmp.eq.s32.totalorder %v1597_v7, %v1798_v44  ;;  %vm2247_vm3 = vcmp.eq.s32.totalorder %v1591_v4, %v1798_v44  ;;  %vm2248_vm2 = vcmp.eq.s32.totalorder %v1586_v59, %v1897_v55 }
 0x16a   : > { %1263 = vmatpush1.msk.msra.mxu1 %vm770_vm1, %v1340_v3  ;;  %vm2244_vm1 = vcmp.eq.s32.totalorder %v1594_v5, %v1897_v55  ;;  %vm2249_vm10 = vcmp.eq.s32.totalorder %v1586_v59, %v1798_v44  ;;  %vm989_vm15 = vcmask 7168  }
 0x16b   : > { %1264 = vmatprep.subr.msk.mxu1 %vm769_vm6, %v1340_v3  ;;  %963 = vadd.xlane.f32.xlu1 %v962_v57  ;;  %vm2238_vm6 = vcmp.eq.s32.totalorder %v1606_v0, %v1798_v44 }
 0x16c   : > { %1265 = vmatpush1.msk.msra.mxu1 %vm768_vm4, %v1340_v3  ;;  %960 = vadd.xlane.f32.xlu0 %v959_v48  ;;  %vm2245_vm4 = vcmp.eq.s32.totalorder %v1594_v5, %v1798_v44 }
 0x16d   : > { %1266 = vmatprep.subr.msk.mxu1 %vm767_vm0, %v1340_v3 }
 0x16e   : > { %1267 = vmatpush1.msk.msra.mxu1 %vm766_vm8, %v1340_v3  ;;  %vm2240_vm8 = vcmp.eq.s32.totalorder %v1603_v9, %v1798_v44 }
 0x16f   : > { %1268 = vmatprep.subr.msk.mxu1 %vm765_vm7, %v1340_v3  ;;  %969 = vadd.xlane.f32.xlu1 %v968_v17 }
 0x170   : > { %1269 = vmatpush1.msk.msra.mxu1 %vm2238_vm6, %v1340_v3  ;;  %966 = vadd.xlane.f32.xlu0 %v965_v6 }
 0x171   : > { %1270 = vmatprep.subr.msk.mxu1 %vm2239_vm11, %v1340_v3 }
 0x172   : > { %1271 = vmatpush1.msk.msra.mxu1 %vm2240_vm8, %v1340_v3 }
 0x173   : > { %1272 = vmatprep.subr.msk.mxu1 %vm761_vm9, %v1340_v3  ;;  %975 = vadd.xlane.f32.xlu1 %v974_v31  ;;  %vm2246_vm9 = vcmp.eq.s32.totalorder %v1591_v4, %v1897_v55 }
 0x174   : > { %1273 = vmatpush1.msk.msra.mxu1 %vm2241_vm12, %v1340_v3  ;;  %972 = vadd.xlane.f32.xlu0 %v971_v24 }
 0x175   : > { %1274 = vmatprep.subr.msk.mxu1 %vm2242_vm5, %v1340_v3 }
 0x176   : > { %1275 = vmatpush1.msk.msra.mxu1 %vm2243_vm13, %v1340_v3 }
 0x177   : > { %1276 = vmatprep.subr.msk.mxu1 %vm2244_vm1, %v1340_v3  ;;  %981 = vadd.xlane.f32.xlu1 %v980_v63 }
 0x178   : > { %1277 = vmatpush1.msk.msra.mxu1 %vm2245_vm4, %v1340_v3  ;;  %978 = vadd.xlane.f32.xlu0 %v977_v28 }
 0x179   : > { %1278 = vmatprep.subr.msk.mxu1 %vm2246_vm9, %v1340_v3 }
 0x17a   : > { %1279 = vmatpush1.msk.msra.mxu1 %vm2247_vm3, %v1340_v3 }
 0x17b   : > { %1280 = vmatprep.subr.msk.mxu1 %vm2248_vm2, %v1340_v3  ;;  %987 = vadd.xlane.f32.xlu1 %v986_v29 }
 0x17c   : > { %1281 = vmatpush1.msk.msra.mxu1 %vm2249_vm10, %v1340_v3  ;;  %984 = vadd.xlane.f32.xlu0 %v983_v30 }
 0x17d   : > { %914 = vmatmul.mubr.f32.vlgmr.msra.gmra.mxu1 %v848_v1 }
 0x1e8   : > { %v949_v4 = vpop.xlane.xlu1 %948 }
 0x1e9   : > { %992 = vst.msk [vmem:[%s2163_s27 + $0x10] sm:$0xff] %vm989_vm15, %v949_v4  ;;  %v943_v3 = vpop.xlane.xlu0 %942 }
 0x1ea   : > { %990 = vst.msk [vmem:[%s2163_s27] sm:$0xff] %vm989_vm15, %v943_v3 }
 0x1ec   : > { %v952_v59 = vpop.xlane.xlu1 %951 }
 0x1ed   : > { %993 = vst.msk [vmem:[%s2163_s27 + $0x18] sm:$0xff] %vm989_vm15, %v952_v59  ;;  %v946_v5 = vpop.xlane.xlu0 %945 }
 0x1ee   : > { %991 = vst.msk [vmem:[%s2163_s27 + $0x8] sm:$0xff] %vm989_vm15, %v946_v5 }
 0x1f0   : > { %v958_v7 = vpop.xlane.xlu1 %957 }
 0x1f1   : > { %995 = vst.msk [vmem:[%s2163_s27 + $0x28] sm:$0xff] %vm989_vm15, %v958_v7  ;;  %v955_v8 = vpop.xlane.xlu0 %954 }
 0x1f2   : > { %994 = vst.msk [vmem:[%s2163_s27 + $0x20] sm:$0xff] %vm989_vm15, %v955_v8 }
 0x1f4   : > { %v964_v9 = vpop.xlane.xlu1 %963 }
 0x1f5   : > { %997 = vst.msk [vmem:[%s2163_s27 + $0x38] sm:$0xff] %vm989_vm15, %v964_v9  ;;  %v961_v0 = vpop.xlane.xlu0 %960 }
 0x1f6   : > { %996 = vst.msk [vmem:[%s2163_s27 + $0x30] sm:$0xff] %vm989_vm15, %v961_v0 }
 0x1f8   : > { %v970_v10 = vpop.xlane.xlu1 %969 }
 0x1f9   : > { %999 = vst.msk [vmem:[%s2163_s27 + $0x48] sm:$0xff] %vm989_vm15, %v970_v10  ;;  %v967_v13 = vpop.xlane.xlu0 %966 }
 0x1fa   : > { %998 = vst.msk [vmem:[%s2163_s27 + $0x40] sm:$0xff] %vm989_vm15, %v967_v13 }
 0x1fc   : > { %v976_v14 = vpop.xlane.xlu1 %975 }
 0x1fd   : > { %1001 = vst.msk [vmem:[%s2163_s27 + $0x58] sm:$0xff] %vm989_vm15, %v976_v14  ;;  %v973_v32 = vpop.xlane.xlu0 %972 }
 0x1fe   : > { %1000 = vst.msk [vmem:[%s2163_s27 + $0x50] sm:$0xff] %vm989_vm15, %v973_v32 }
 0x200   : > { %v982_v44 = vpop.xlane.xlu1 %981 }
 0x201   : > { %1003 = vst.msk [vmem:[%s2163_s27 + $0x68] sm:$0xff] %vm989_vm15, %v982_v44  ;;  %v979_v20 = vpop.xlane.xlu0 %978 }
 0x202   : > { %1002 = vst.msk [vmem:[%s2163_s27 + $0x60] sm:$0xff] %vm989_vm15, %v979_v20 }
 0x204   : > { %v988_v23 = vpop.xlane.xlu1 %987 }
 0x205   : > { %1005 = vst.msk [vmem:[%s2163_s27 + $0x78] sm:$0xff] %vm989_vm15, %v988_v23  ;;  %v985_v27 = vpop.xlane.xlu0 %984 }
 0x206   : > { %1004 = vst.msk [vmem:[%s2163_s27 + $0x70] sm:$0xff] %vm989_vm15, %v985_v27 }
 0x23d   : > { %v915_v34 = vpop.f32.mrf.mxu1 }
 0x23f   : > { %v917_v49 = vpop.f32.mrf.mxu1 }
 0x240   : > { %v922_v50 = vcombine.low %v915_v34, %v917_v49 }
 0x242   : > { %924 = vst [vmem:[%s288_s30] sm:$0xff] %v922_v50 }
 0x243 PF: > { %s16_s20 = sadd.s32 1, %s1337_s20   ;;  %s2250_s18 = smov %s1333_s19 }
 0x244   : > { %p13_p5 = scmp.ge.s32.totalorder %s16_s20, 4   ;;  %s2251_s19 = smov %s2253_s21 }
 0x246   :  { %15 = sbr.rel (!%p13_p5) target bundleno = 2 (0x2), region = 87 }

</bundles_post_ra>
